<compile_context>
chip_gen: v7x
topology: tpu7x:2x2x1
jax: 0.10.0
libtpu: 0.0.40
codegen_flags: <defaults>
</compile_context>

<pallas_src>
import functools
import math

import jax
import jax.numpy as jnp
from jax.experimental import pallas as pl
from jax.experimental.pallas import tpu as pltpu

LN_EPS = 1e-5  # PyTorch nn.LayerNorm default


def _round_up(n, m):
    return ((n + m - 1) // m) * m


# ----------------------------------------------------------------------------- kernel
def beatmap_decoder_kernel(
    x_ref,      # [TM, H]            f32 input rows (cast to bf16 in-kernel)
    w1_ref,     # [H, H2_pad]        bf16 feature_extractor weight (cols zero-padded)
    ln_ref,     # [8, H2_pad]        f32 packed: row0=b1, row1=gamma, row2=beta (zero-padded)
    wh_ref,     # [H2_pad, Dout_pad] bf16 concatenated head weights (zero-padded)
    bh_ref,     # [1, Dout_pad]      f32 concatenated head biases (zero-padded)
    out_ref,    # [TM, Dout_pad]     bf16 fused head outputs
    *,
    h2_true,    # true (unpadded) LayerNorm width, static
):
    # Linear(hidden -> hidden//2): bf16 operands, f32 accumulation on the MXU.
    x = x_ref[...].astype(jnp.bfloat16)
    h = jnp.dot(x, w1_ref[...], preferred_element_type=jnp.float32)
    h = h + ln_ref[0:1, :]                       # + b1  (padded lanes stay exactly 0)

    # LayerNorm, one-pass statistics over the true H2 width.  Padded lanes of h are
    # exactly zero, so sums over the padded width equal sums over the true width.
    inv_n = 1.0 / float(h2_true)
    mean = jnp.sum(h, axis=-1, keepdims=True) * inv_n
    var = jnp.maximum(jnp.sum(h * h, axis=-1, keepdims=True) * inv_n - mean * mean, 0.0)
    inv = jax.lax.rsqrt(var + LN_EPS)
    # gamma/beta are zero on padded lanes, so hn is zero there too.
    hn = (h - mean) * inv * ln_ref[1:2, :] + ln_ref[2:3, :]

    # ReLU (Dropout is identity at inference), cast to bf16 for the head matmul.
    feats = jnp.maximum(hn, 0.0).astype(jnp.bfloat16)

    # All four heads fused into one lane-dense matmul; f32 accumulate, bf16 store.
    out = jnp.dot(feats, wh_ref[...], preferred_element_type=jnp.float32)
    out_ref[...] = (out + bh_ref[...]).astype(out_ref.dtype)


# ------------------------------------------------------------------- parameter prep
def prepare_decoder_params(params):
    """One-time padding/casting of parameters (hoisted out of the forward path)."""
    w1 = params["w1"]
    wh = params["wh"]
    H, H2 = w1.shape
    Dout = wh.shape[1]
    H2_pad = _round_up(H2, 128)
    Dout_pad = _round_up(Dout, 128)

    w1_p = jnp.pad(w1.astype(jnp.bfloat16), ((0, 0), (0, H2_pad - H2)))
    wh_p = jnp.pad(wh.astype(jnp.bfloat16), ((0, H2_pad - H2), (0, Dout_pad - Dout)))

    ln = jnp.zeros((8, H2_pad), jnp.float32)
    ln = ln.at[0, :H2].set(params["b1"].astype(jnp.float32))
    ln = ln.at[1, :H2].set(params["gamma"].astype(jnp.float32))
    ln = ln.at[2, :H2].set(params["beta"].astype(jnp.float32))

    bh_p = jnp.pad(params["bh"].astype(jnp.float32).reshape(1, Dout),
                   ((0, 0), (0, Dout_pad - Dout)))

    return {"w1": w1_p, "ln": ln, "wh": wh_p, "bh": bh_p}


# ------------------------------------------------------------------------- forward
@functools.partial(jax.jit, static_argnames=("n_object_types", "n_positions", "tile_m"))
def beatmap_decoder_forward(x, prepared, *, n_object_types, n_positions, tile_m=256):
    """x: [B, S, H] float32. prepared: output of prepare_decoder_params.

    Returns dict of head outputs (bf16) like the torch module.
    """
    B, S, H = x.shape
    H2 = H // 2
    d_type = n_object_types
    d_pos = 2 * n_positions
    Dout = d_type + d_pos + 2
    M = B * S

    H2_pad = prepared["w1"].shape[1]
    Dout_pad = prepared["wh"].shape[1]

    # Row tile: multiple of 256 for large M (fills the 256-tall MXU on v6e/v7x and
    # gives the v7x megacore / pipeliner >= 2 grid steps); fall back for tiny M.
    if M >= tile_m:
        TM = tile_m
    else:
        TM = _round_up(M, 8)
    M_pad = _round_up(M, TM)

    x2 = x.reshape(M, H)
    if M_pad != M:
        x2 = jnp.pad(x2, ((0, M_pad - M), (0, 0)))

    kernel = functools.partial(beatmap_decoder_kernel, h2_true=H2)

    flops = 2 * M_pad * (H * H2_pad + H2_pad * Dout_pad)
    bytes_accessed = (
        M_pad * H * 4              # x (f32, read once)
        + M_pad * Dout_pad * 2     # out (bf16)
        + H * H2_pad * 2           # w1 (bf16)
        + H2_pad * Dout_pad * 2    # wh (bf16)
        + 8 * H2_pad * 4           # packed LN params
        + Dout_pad * 4             # bh
    )

    out = pl.pallas_call(
        kernel,
        out_shape=jax.ShapeDtypeStruct((M_pad, Dout_pad), jnp.bfloat16),
        grid=(M_pad // TM,),
        in_specs=[
            pl.BlockSpec((TM, H), lambda i: (i, 0)),            # x: tiled over rows
            pl.BlockSpec((H, H2_pad), lambda i: (0, 0)),        # w1: VMEM-resident
            pl.BlockSpec((8, H2_pad), lambda i: (0, 0)),        # packed b1/gamma/beta
            pl.BlockSpec((H2_pad, Dout_pad), lambda i: (0, 0)),  # fused head weights
            pl.BlockSpec((1, Dout_pad), lambda i: (0, 0)),      # fused head biases
        ],
        out_specs=pl.BlockSpec((TM, Dout_pad), lambda i: (i, 0)),
        compiler_params=pltpu.CompilerParams(
            dimension_semantics=("parallel",),
            vmem_limit_bytes=48 * 1024 * 1024,
        ),
        cost_estimate=pl.CostEstimate(
            flops=flops, transcendentals=M_pad, bytes_accessed=bytes_accessed
        ),
    )(x2, prepared["w1"], prepared["ln"], prepared["wh"], prepared["bh"])

    # Head slicing stays inside this jit so XLA fuses it with the kernel output
    # (no extra materialized HBM copies).
    out = out[:M].reshape(B, S, Dout_pad)
    return {
        "object_type": out[..., :d_type],
        "position": out[..., d_type:d_type + d_pos],
        "time_offset": out[..., d_type + d_pos:d_type + d_pos + 1],
        "slider_length": out[..., d_type + d_pos + 1:d_type + d_pos + 2],
    }


# ------------------------------------------------------------------ init / reference
def init_params(key, hidden_dim, n_object_types, n_positions):
    """Deterministic init matching torch nn.Linear/LayerNorm shapes."""
    H = hidden_dim
    H2 = H // 2
    d_type = n_object_types
    d_pos = n_positions * 2

    keys = jax.random.split(key, 10)

    def linear_init(kw, kb, fan_in, fan_out):
        bound = 1.0 / math.sqrt(fan_in)
        w = jax.random.uniform(kw, (fan_in, fan_out), jnp.float32, -bound, bound)
        b = jax.random.uniform(kb, (fan_out,), jnp.float32, -bound, bound)
        return w, b

    w1, b1 = linear_init(keys[0], keys[1], H, H2)
    gamma = jnp.ones((H2,), jnp.float32)
    beta = jnp.zeros((H2,), jnp.float32)

    w_type, b_type = linear_init(keys[2], keys[3], H2, d_type)
    w_pos, b_pos = linear_init(keys[4], keys[5], H2, d_pos)
    w_time, b_time = linear_init(keys[6], keys[7], H2, 1)
    w_slider, b_slider = linear_init(keys[8], keys[9], H2, 1)

    wh = jnp.concatenate([w_type, w_pos, w_time, w_slider], axis=1)   # [H2, Dout]
    bh = jnp.concatenate([b_type, b_pos, b_time, b_slider], axis=0)   # [Dout]

    return {"w1": w1, "b1": b1, "gamma": gamma, "beta": beta, "wh": wh, "bh": bh}


def reference_forward(x, params, n_object_types, n_positions):
    """Pure-JAX reference with matching bf16 matmul operands / f32 accumulation."""
    h = jnp.dot(x.astype(jnp.bfloat16), params["w1"].astype(jnp.bfloat16),
                preferred_element_type=jnp.float32) + params["b1"]
    mean = jnp.mean(h, axis=-1, keepdims=True)
    var = jnp.mean((h - mean) ** 2, axis=-1, keepdims=True)
    hn = (h - mean) / jnp.sqrt(var + LN_EPS) * params["gamma"] + params["beta"]
    feats = jnp.maximum(hn, 0.0).astype(jnp.bfloat16)
    out = jnp.dot(feats, params["wh"].astype(jnp.bfloat16),
                  preferred_element_type=jnp.float32) + params["bh"]
    d_type = n_object_types
    d_pos = n_positions * 2
    return {
        "object_type": out[..., :d_type],
        "position": out[..., d_type:d_type + d_pos],
        "time_offset": out[..., d_type + d_pos:d_type + d_pos + 1],
        "slider_length": out[..., d_type + d_pos + 1:],
    }


if __name__ == "__main__":
    # Small shapes consistent with the module
    batch, seq, hidden_dim = 2, 8, 32
    n_object_types, n_positions = 4, 100

    key = jax.random.PRNGKey(0)
    kx, kp = jax.random.split(key)
    x = jax.random.normal(kx, (batch, seq, hidden_dim), jnp.float32)
    params = init_params(kp, hidden_dim, n_object_types, n_positions)

    # One-time parameter preparation (hoisted out of the per-call path).
    prepared = prepare_decoder_params(params)
    prepared = jax.tree_util.tree_map(jax.block_until_ready, prepared)

    outs = beatmap_decoder_forward(
        x, prepared, n_object_types=n_object_types, n_positions=n_positions)
    outs = jax.tree_util.tree_map(jax.block_until_ready, outs)

    refs = reference_forward(x, params, n_object_types, n_positions)
    for name in ("object_type", "position", "time_offset", "slider_length"):
        assert outs[name].shape == refs[name].shape, name
        assert jnp.allclose(outs[name].astype(jnp.float32), refs[name],
                            atol=2e-2, rtol=2e-2), name

    print("KERNEL_OK")
</pallas_src>

<mosaic_0001>
module attributes {stable_mosaic.version = 11 : i64} {
  func.func @beatmap_decoder_kernel(%arg0: i32, %arg1: memref<16x32xf32, #tpu.memory_space<vmem>>, %arg2: memref<32x128xbf16, #tpu.memory_space<vmem>>, %arg3: memref<8x128xf32, #tpu.memory_space<vmem>>, %arg4: memref<128x256xbf16, #tpu.memory_space<vmem>>, %arg5: memref<1x256xf32, #tpu.memory_space<vmem>>, %arg6: memref<16x256xbf16, #tpu.memory_space<vmem>>) attributes {dimension_semantics = [#tpu.dimension_semantics<parallel>], iteration_bounds = array<i64: 1>, scalar_prefetch = 0 : i64, scratch_operands = 0 : i64, tpu.core_type = #tpu.core_type<tc>, window_params = [{transform_indices = @transform_0, window_bounds = array<i64: 16, 32>}, {pipeline_mode = #tpu.pipeline_mode<synchronous>, transform_indices = @transform_1, window_bounds = array<i64: 32, 128>}, {pipeline_mode = #tpu.pipeline_mode<synchronous>, transform_indices = @transform_2, window_bounds = array<i64: 8, 128>}, {pipeline_mode = #tpu.pipeline_mode<synchronous>, transform_indices = @transform_3, window_bounds = array<i64: 128, 256>}, {pipeline_mode = #tpu.pipeline_mode<synchronous>, transform_indices = @transform_4, window_bounds = array<i64: 1, 256>}, {transform_indices = @transform_5, window_bounds = array<i64: 16, 256>}]} {
    %c0 = arith.constant 0 : index
    %c0_0 = arith.constant 0 : index
    %0 = vector.load %arg1[%c0, %c0_0] : memref<16x32xf32, #tpu.memory_space<vmem>>, vector<16x32xf32>
    %1 = arith.truncf %0 : vector<16x32xf32> to vector<16x32xbf16>
    %c0_1 = arith.constant 0 : index
    %c0_2 = arith.constant 0 : index
    %2 = vector.load %arg2[%c0_1, %c0_2] : memref<32x128xbf16, #tpu.memory_space<vmem>>, vector<32x128xbf16>
    %cst = arith.constant dense<0.000000e+00> : vector<16x128xf32>
    %3 = tpu.matmul %1, %2, %cst {dimension_numbers = #tpu.dot_dimension_numbers<[1], [0], [0], [1], [0, 0, 1, 1], [], []>} : vector<16x32xbf16>, vector<32x128xbf16>, vector<16x128xf32> -> vector<16x128xf32>
    %c0_3 = arith.constant 0 : index
    %c0_4 = arith.constant 0 : index
    %4 = vector.load %arg3[%c0_3, %c0_4] : memref<8x128xf32, #tpu.memory_space<vmem>>, vector<1x128xf32>
    %5 = vector.broadcast %4 : vector<1x128xf32> to vector<16x128xf32>
    %6 = arith.addf %3, %5 : vector<16x128xf32>
    %cst_5 = arith.constant dense<0.000000e+00> : vector<16xf32>
    %7 = vector.multi_reduction <add>, %6, %cst_5 [1] : vector<16x128xf32> to vector<16xf32>
    %8 = vector.shape_cast %7 : vector<16xf32> to vector<16x1xf32>
    %cst_6 = arith.constant 6.250000e-02 : f32
    %9 = vector.broadcast %cst_6 : f32 to vector<16x1xf32>
    %10 = arith.mulf %8, %9 : vector<16x1xf32>
    %11 = arith.mulf %6, %6 : vector<16x128xf32>
    %cst_7 = arith.constant dense<0.000000e+00> : vector<16xf32>
    %12 = vector.multi_reduction <add>, %11, %cst_7 [1] : vector<16x128xf32> to vector<16xf32>
    %13 = vector.shape_cast %12 : vector<16xf32> to vector<16x1xf32>
    %cst_8 = arith.constant 6.250000e-02 : f32
    %14 = vector.broadcast %cst_8 : f32 to vector<16x1xf32>
    %15 = arith.mulf %13, %14 : vector<16x1xf32>
    %16 = arith.mulf %10, %10 : vector<16x1xf32>
    %17 = arith.subf %15, %16 : vector<16x1xf32>
    %cst_9 = arith.constant 0.000000e+00 : f32
    %18 = vector.broadcast %cst_9 : f32 to vector<16x1xf32>
    %19 = arith.maximumf %17, %18 : vector<16x1xf32>
    %cst_10 = arith.constant 9.99999974E-6 : f32
    %20 = vector.broadcast %cst_10 : f32 to vector<16x1xf32>
    %21 = arith.addf %19, %20 : vector<16x1xf32>
    %22 = math.rsqrt %21 : vector<16x1xf32>
    %23 = vector.broadcast %10 : vector<16x1xf32> to vector<16x128xf32>
    %24 = arith.subf %6, %23 : vector<16x128xf32>
    %25 = vector.broadcast %22 : vector<16x1xf32> to vector<16x128xf32>
    %26 = arith.mulf %24, %25 : vector<16x128xf32>
    %c1 = arith.constant 1 : index
    %c0_11 = arith.constant 0 : index
    %27 = vector.load %arg3[%c1, %c0_11] : memref<8x128xf32, #tpu.memory_space<vmem>>, vector<1x128xf32>
    %28 = vector.broadcast %27 : vector<1x128xf32> to vector<16x128xf32>
    %29 = arith.mulf %26, %28 : vector<16x128xf32>
    %c2 = arith.constant 2 : index
    %c0_12 = arith.constant 0 : index
    %30 = vector.load %arg3[%c2, %c0_12] : memref<8x128xf32, #tpu.memory_space<vmem>>, vector<1x128xf32>
    %31 = vector.broadcast %30 : vector<1x128xf32> to vector<16x128xf32>
    %32 = arith.addf %29, %31 : vector<16x128xf32>
    %cst_13 = arith.constant 0.000000e+00 : f32
    %33 = vector.broadcast %cst_13 : f32 to vector<16x128xf32>
    %34 = arith.maximumf %32, %33 : vector<16x128xf32>
    %35 = arith.truncf %34 : vector<16x128xf32> to vector<16x128xbf16>
    %c0_14 = arith.constant 0 : index
    %c0_15 = arith.constant 0 : index
    %36 = vector.load %arg4[%c0_14, %c0_15] : memref<128x256xbf16, #tpu.memory_space<vmem>>, vector<128x256xbf16>
    %cst_16 = arith.constant dense<0.000000e+00> : vector<16x256xf32>
    %37 = tpu.matmul %35, %36, %cst_16 {dimension_numbers = #tpu.dot_dimension_numbers<[1], [0], [0], [1], [0, 0, 1, 1], [], []>} : vector<16x128xbf16>, vector<128x256xbf16>, vector<16x256xf32> -> vector<16x256xf32>
    %c0_17 = arith.constant 0 : index
    %c0_18 = arith.constant 0 : index
    %38 = vector.load %arg5[%c0_17, %c0_18] : memref<1x256xf32, #tpu.memory_space<vmem>>, vector<1x256xf32>
    %39 = vector.broadcast %38 : vector<1x256xf32> to vector<16x256xf32>
    %40 = arith.addf %37, %39 : vector<16x256xf32>
    %41 = arith.truncf %40 : vector<16x256xf32> to vector<16x256xbf16>
    %c0_19 = arith.constant 0 : index
    %c0_20 = arith.constant 0 : index
    %42 = vector.load %arg6[%c0_19, %c0_20] : memref<16x256xbf16, #tpu.memory_space<vmem>>, vector<16x256xbf16>
    tpu.vector_store %arg6[%c0_19, %c0_20], %41 {strides = array<i32>} : memref<16x256xbf16, #tpu.memory_space<vmem>>, vector<16x256xbf16>,
    return
  }
  func.func @transform_0(%arg0: i32) -> (i32, i32) {
    %c0_i32 = arith.constant 0 : i32
    %c0_i32_0 = arith.constant 0 : i32
    return %arg0, %c0_i32 : i32, i32
  }
  func.func @transform_1(%arg0: i32) -> (i32, i32) {
    %c0_i32 = arith.constant 0 : i32
    %c0_i32_0 = arith.constant 0 : i32
    %c0_i32_1 = arith.constant 0 : i32
    return %c0_i32, %c0_i32_0 : i32, i32
  }
  func.func @transform_2(%arg0: i32) -> (i32, i32) {
    %c0_i32 = arith.constant 0 : i32
    %c0_i32_0 = arith.constant 0 : i32
    %c0_i32_1 = arith.constant 0 : i32
    return %c0_i32, %c0_i32_0 : i32, i32
  }
  func.func @transform_3(%arg0: i32) -> (i32, i32) {
    %c0_i32 = arith.constant 0 : i32
    %c0_i32_0 = arith.constant 0 : i32
    %c0_i32_1 = arith.constant 0 : i32
    return %c0_i32, %c0_i32_0 : i32, i32
  }
  func.func @transform_4(%arg0: i32) -> (i32, i32) {
    %c0_i32 = arith.constant 0 : i32
    %c0_i32_0 = arith.constant 0 : i32
    %c0_i32_1 = arith.constant 0 : i32
    return %c0_i32, %c0_i32_0 : i32, i32
  }
  func.func @transform_5(%arg0: i32) -> (i32, i32) {
    %c0_i32 = arith.constant 0 : i32
    %c0_i32_0 = arith.constant 0 : i32
    return %arg0, %c0_i32 : i32, i32
  }
}

</mosaic_0001>

<bundles_post_ra>
// kernel: beatmap_decoder_forward.1
= control target key start
LH: loop header
LB: loop body
LE: loop exit
PB: predicated region body
PF: predicated region fallthrough
CT: control target
= control target key end

     0   :  { %10 = vsyncpa [#allocation3], 0  ;;  %s602_s0 = inlined_call_operand.vmem [shape: f32[16,32], index: 0, kind: input, shape index: {}]   ;;  %s603_s1 = inlined_call_operand.hbm [shape: bf16[32,128], index: 1, kind: input, shape index: {}]   ;;  %s604_s2 = inlined_call_operand.hbm [shape: f32[8,128], index: 2, kind: input, shape index: {}]   ;;  %s605_s3 = inlined_call_operand.hbm [shape: bf16[128,256], index: 3, kind: input, shape index: {}]   ;;  %s606_s4 = inlined_call_operand.vmem [shape: f32[1,256], index: 4, kind: input, shape index: {}]   ;;  %s607_s5 = inlined_call_operand.vmem [shape: bf16[16,256], index: 5, kind: output, shape index: {}]  }
   0x1   :  { %11 = vsyncpa [#allocation5], 0  ;;  %s492_s18 = smov [#allocation4]   ;;  %s493_s20 = smov [#allocation2]  }
   0x2   :  { %s32_s19 = sshll.u32 %s492_s18, 4  ;;  %s19_s21 = sshll.u32 %s493_s20, 4  ;;  %s33_s19 = int_to_ptr.vmem [resolvable:$true] %s32_s19  ;;  %s532_s21 = int_to_ptr.vmem [resolvable:$true] %s19_s21 }
   0x3   :  { %s422_s24 = scalar_lea.hbm %s604_s2, 128 }
   0x4   :  { %p423_p0 = scmp.ne.s32.totalorder %s604_s2, %s422_s24  ;;  %p426_p1 = scmp.lt.u32.totalorder %s422_s24, %s604_s2 }
   0x6   :  { %p428_p2 = pnand %p426_p1, %p423_p0 }
   0x8   :  { %431 = shalt.err (!%p428_p2)
}
   0x9   :  { %s432_s29 = scalar_lea.vmem %s33_s19, 128  ;;  %p437_p4 = scmp.lt.s32.totalorder %s33_s19, %s33_s19 }
   0xa   :  { %p433_p3 = scmp.ne.s32.totalorder %s33_s19, %s432_s29  ;;  %p438_p5 = scmp.lt.s32.totalorder %s432_s29, %s432_s29 }
   0xc   :  { %p439_p6 = por %p438_p5, %p437_p4 }
   0xe   :  { %p440_p7 = pnand %p439_p6, %p433_p3 }
  0x10   :  { %443 = shalt.err (!%p440_p7)
}
  0x11   :  { %35 = dma.hbm_to_vmem [thread:$0]  %s604_s2, 128, %s33_s19, [#allocation5]  }
  0x12   :  { %s444_s9 = scalar_lea.hbm %s603_s1, 256 }
  0x13   :  { %p445_p8 = scmp.ne.s32.totalorder %s603_s1, %s444_s9  ;;  %p448_p9 = scmp.lt.u32.totalorder %s444_s9, %s603_s1 }
  0x15   :  { %p450_p10 = pnand %p448_p9, %p445_p8 }
  0x17   :  { %453 = shalt.err (!%p450_p10)
}
  0x18   :  { %s454_s14 = scalar_lea.vmem %s532_s21, 256  ;;  %p459_p12 = scmp.lt.s32.totalorder %s532_s21, %s532_s21 }
  0x19   :  { %p455_p11 = scmp.ne.s32.totalorder %s532_s21, %s454_s14  ;;  %p460_p13 = scmp.lt.s32.totalorder %s454_s14, %s454_s14 }
  0x1b   :  { %p461_p0 = por %p460_p13, %p459_p12 }
  0x1d   :  { %p462_p1 = pnand %p461_p0, %p455_p11 }
  0x1f   :  { %465 = shalt.err (!%p462_p1)
}
  0x20   :  { %s494_s2 = smov 64   ;;  %s495_s15 = smov 4  }
  0x21   :  { %25 = dma.hbm_to_vmem [thread:$0]  %s603_s1, 256, %s532_s21, [#allocation3], %s494_s2, %s494_s2, %s495_s15  }
  0x22   :  { %s496_s18 = smov [#allocation6]   ;;  %s466_s23 = scalar_lea.hbm %s605_s3, 2048 }
  0x23   :  { %s41_s19 = sshll.u32 %s496_s18, 4  ;;  %p467_p2 = scmp.ne.s32.totalorder %s605_s3, %s466_s23  ;;  %s42_s19 = int_to_ptr.vmem [resolvable:$true] %s41_s19 }
  0x24   :  { %p470_p3 = scmp.lt.u32.totalorder %s466_s23, %s605_s3 }
  0x26   :  { %p472_p4 = pnand %p470_p3, %p467_p2 }
  0x28   :  { %475 = shalt.err (!%p472_p4)
}
  0x29   :  { %s476_s28 = scalar_lea.vmem %s42_s19, 2048  ;;  %p481_p6 = scmp.lt.s32.totalorder %s42_s19, %s42_s19 }
  0x2a   :  { %p477_p5 = scmp.ne.s32.totalorder %s42_s19, %s476_s28  ;;  %p482_p7 = scmp.lt.s32.totalorder %s476_s28, %s476_s28 }
  0x2c   :  { %p483_p8 = por %p482_p7, %p481_p6 }
  0x2e   :  { %p484_p9 = pnand %p483_p8, %p477_p5 }
  0x30   :  { %487 = shalt.err (!%p484_p9)
}
  0x31   :  { %s497_s1 = smov 128   ;;  %s498_s21 = smov 8  }
  0x32   :  { %47 = dma.hbm_to_vmem [thread:$0]  %s605_s3, 2048, %s42_s19, [#allocation5], %s497_s1, %s497_s1, %s498_s21  }
  0x33   :  { %488 = dma.done.wait [#allocation3], 256  }
  0x34   :  { %489 = vsyncadd [#allocation3], 4294967040 }
  0x35   :  { %490 = dma.done.wait [#allocation5], 2176  }
  0x36   :  { %491 = vsyncadd [#allocation5], 4294965120  ;;  %v499_v0 = vmov 0.0   ;;  %vm500_vm0 = vmmov 0   ;;  %v392_v1 = vld [vmem:[#allocation2] sm:$0xff]   ;;  %v393_v2 = vld [vmem:[#allocation2 + $0x8] sm:$0xff]   ;;  %v192_v63 = vlaneseq }
  0x37   :  { %374 = vmatprep.subr.bf16.mxu0 %v499_v0  ;;  %378 = vmatprep.mubr.msk.bf16.mxu0 %vm500_vm0, %v499_v0  ;;  %v60_v3 = vld [vmem:[%s602_s0] sm:$0xff]  ;;  %v61_v4 = vld [vmem:[%s602_s0 + $0x8] sm:$0xff]  ;;  %vm84_vm1 = vcmask 261120   ;;  %v345_v6 = vld [vmem:[#allocation4] ss:$0 sm:$0xff]  ;;  %v501_v26 = vmov 0  }
  0x38   :  { %375 = vmatpush3.bf16.msra.mxu0 %v392_v1  ;;  %v62_v5 = vpack.c.bf16 %v61_v4, %v60_v3  ;;  %v394_v15 = vld [vmem:[#allocation6 + $0x4] ss:$8 sps:$4 sm:$0xff]   ;;  %v396_v16 = vld [vmem:[#allocation6] ss:$8 sps:$4 sm:$0xff]   ;;  %v397_v17 = vld [vmem:[#allocation6 + $0x14] ss:$8 sps:$4 sm:$0xff]   ;;  %314 = vmatprep.mubr.bf16.mxu1 %v501_v26 }
  0x39   :  { %376 = vmatprep.subr.bf16.mxu0 %v499_v0  ;;  %282 = vmatprep.subr.bf16.mxu1 %v394_v15  ;;  %v399_v18 = vld [vmem:[#allocation6 + $0x10] ss:$8 sps:$4 sm:$0xff]   ;;  %v400_v19 = vld [vmem:[#allocation6 + $0x24] ss:$8 sps:$4 sm:$0xff]   ;;  %v402_v20 = vld [vmem:[#allocation6 + $0x20] ss:$8 sps:$4 sm:$0xff]  }
  0x3a   :  { %283 = vmatpush1.bf16.msra.mxu1 %v396_v16  ;;  %v403_v21 = vld [vmem:[#allocation6 + $0x34] ss:$8 sps:$4 sm:$0xff]   ;;  %v405_v22 = vld [vmem:[#allocation6 + $0x30] ss:$8 sps:$4 sm:$0xff]   ;;  %v406_v23 = vld [vmem:[#allocation6 + $0x44] ss:$8 sps:$4 sm:$0xff]  }
  0x3b   :  { %284 = vmatprep.subr.bf16.mxu1 %v397_v17  ;;  %v408_v24 = vld [vmem:[#allocation6 + $0x40] ss:$8 sps:$4 sm:$0xff]   ;;  %v409_v25 = vld [vmem:[#allocation6 + $0x54] ss:$8 sps:$4 sm:$0xff]   ;;  %v411_v27 = vld [vmem:[#allocation6 + $0x50] ss:$8 sps:$4 sm:$0xff]  }
  0x3c   :  { %377 = vmatpush3.bf16.msra.mxu0 %v393_v2  ;;  %v412_v28 = vld [vmem:[#allocation6 + $0x64] ss:$8 sps:$4 sm:$0xff]   ;;  %v414_v29 = vld [vmem:[#allocation6 + $0x60] ss:$8 sps:$4 sm:$0xff]   ;;  %v415_v30 = vld [vmem:[#allocation6 + $0x74] ss:$8 sps:$4 sm:$0xff]  }
  0x3d   :  { %v417_v31 = vld [vmem:[#allocation6 + $0x70] ss:$8 sps:$4 sm:$0xff]   ;;  %v193_v0 = vshrl.u32 %v192_v63, 7  ;;  %v190_v2 = vld [vmem:[%s606_s4] sm:$0x3] }
  0x3e   :  { %285 = vmatpush1.bf16.msra.mxu1 %v399_v18  ;;  %v349_v50 = vld [vmem:[#allocation4 + $0x1] ss:$0 sm:$0xff]  ;;  %v350_v55 = vld [vmem:[#allocation4 + $0x2] ss:$0 sm:$0xff] }
  0x3f   :  { %379 = vmatmul.mubr.msk.bf16.vlgmr.msra.gmra.mrb[0].mxu0 %vm84_vm1, %v62_v5  ;;  %286 = vmatprep.subr.bf16.mxu1 %v400_v19  ;;  %v194_v1 = vsub.s32 0, %v193_v0  ;;  %v198_v3 = vsub.s32 1, %v193_v0 }
  0x41   :  { %v195_v4 = vrot.slane %v190_v2, %v194_v1  ;;  %v199_v5 = vrot.slane %v190_v2, %v198_v3 }
  0x42   :  { %287 = vmatpush1.bf16.msra.mxu1 %v402_v20 }
  0x43   :  { %288 = vmatprep.subr.bf16.mxu1 %v403_v21 }
  0x46   :  { %289 = vmatpush1.bf16.msra.mxu1 %v405_v22 }
  0x47   :  { %290 = vmatprep.subr.bf16.mxu1 %v406_v23 }
  0x4a   :  { %291 = vmatpush1.bf16.msra.mxu1 %v408_v24 }
  0x4b   :  { %292 = vmatprep.subr.bf16.mxu1 %v409_v25 }
  0x4e   :  { %293 = vmatpush1.bf16.msra.mxu1 %v411_v27 }
  0x4f   :  { %294 = vmatprep.subr.bf16.mxu1 %v412_v28 }
  0x52   :  { %295 = vmatpush1.bf16.msra.mxu1 %v414_v29 }
  0x53   :  { %296 = vmatprep.subr.bf16.mxu1 %v415_v30 }
  0x56   :  { %297 = vmatpush1.bf16.msra.mxu1 %v417_v31 }
 0x112   :  { %v122_v7 = vpop.f32.mrb[0].mxu0 }
 0x113   :  { %v581_v8 = vadd.f32 %v345_v6, %v122_v7  ;;  %v380_v9 = vpop.f32.mrb[1].mxu0 }
 0x114   :  { %v125_v10 = vpop.f32.mrb[2].mxu0 }
 0x115   :  { %v583_v11 = vadd.f32 %v345_v6, %v125_v10  ;;  %129 = vadd.xlane.f32.xlu0 %v581_v8  ;;  %v381_v12 = vpop.f32.mrb[3].mxu0  ;;  %v135_v13 = vmul.f32 %v581_v8, %v581_v8 }
 0x117   :  { %137 = vadd.xlane.f32.xlu1 %v135_v13  ;;  %v136_v14 = vmul.f32 %v583_v11, %v583_v11 }
 0x119   :  { %131 = vadd.xlane.f32.xlu0 %v583_v11 }
 0x11b   :  { %139 = vadd.xlane.f32.xlu1 %v136_v14 }
 0x1a2   :  { %v130_v32 = vpop.xlane.xlu0 %129 }
 0x1a3   :  { %v133_v33 = vmul.f32 0.0625, %v130_v32 }
 0x1a4   :  { %v138_v34 = vpop.xlane.xlu1 %137 }
 0x1a5   :  { %v143_v35 = vmul.f32 %v133_v33, %v133_v33  ;;  %v141_v36 = vmul.f32 0.0625, %v138_v34  ;;  %v153_v48 = vsub.f32 %v581_v8, %v133_v33 }
 0x1a6   :  { %v132_v37 = vpop.xlane.xlu0 %131 }
 0x1a7   :  { %v145_v38 = vsub.f32 %v141_v36, %v143_v35  ;;  %v134_v39 = vmul.f32 0.0625, %v132_v37 }
 0x1a8   :  { %v140_v40 = vpop.xlane.xlu1 %139 }
 0x1a9   :  { %v147_v41 = vmax.f32 %v145_v38, 0.0  ;;  %v144_v42 = vmul.f32 %v134_v39, %v134_v39  ;;  %v142_v43 = vmul.f32 0.0625, %v140_v40  ;;  %v154_v52 = vsub.f32 %v583_v11, %v134_v39 }
 0x1ab   :  { %v149_v44 = vadd.f32 1e-05, %v147_v41  ;;  %v146_v45 = vsub.f32 %v142_v43, %v144_v42 }
 0x1ad   :  { %418 = vrsqrt.f32 %v149_v44  ;;  %v148_v46 = vmax.f32 %v146_v45, 0.0 }
 0x1af   :  { %v150_v47 = vadd.f32 1e-05, %v148_v46 }
 0x1b1   :  { %420 = vrsqrt.f32 %v150_v47 }
 0x1b7   :  { %v419_v49 = vpop.eup %418 }
 0x1b8   :  { %v155_v51 = vmul.f32 %v419_v49, %v153_v48 }
 0x1ba   :  { %v162_v53 = vmul.f32 %v349_v50, %v155_v51 }
 0x1bb   :  { %v421_v54 = vpop.eup %420 }
 0x1bc   :  { %v156_v56 = vmul.f32 %v421_v54, %v154_v52  ;;  %v169_v58 = vadd.f32 %v350_v55, %v162_v53 }
 0x1be   :  { %v163_v57 = vmul.f32 %v349_v50, %v156_v56  ;;  %v171_v60 = vmax.f32 %v169_v58, 0.0 }
 0x1c0   :  { %v170_v59 = vadd.f32 %v350_v55, %v163_v57 }
 0x1c2   :  { %v172_v61 = vmax.f32 %v170_v59, 0.0 }
 0x1c4   :  { %v173_v62 = vpack.c.bf16 %v172_v61, %v171_v60 }
 0x1c6   :  { %315 = vmatmul.mubr.bf16.vlgmr.msra.gmra.mrb[0].mxu1 %v173_v62 }
 0x299   :  { %v316_v6 = vpop.f32.mrb[0].mxu1 }
 0x29a   :  { %v317_v7 = vadd.f32 %v316_v6, %v195_v4  ;;  %v318_v8 = vpop.f32.mrb[1].mxu1 }
 0x29b   :  { %v319_v9 = vadd.f32 %v318_v8, %v199_v5  ;;  %v320_v10 = vpop.f32.mrb[2].mxu1 }
 0x29c   :  { %v321_v11 = vadd.f32 %v320_v10, %v195_v4  ;;  %v322_v12 = vpop.f32.mrb[3].mxu1 }
 0x29d   :  { %v369_v13 = vpack.c.bf16 %v319_v9, %v317_v7  ;;  %v323_v14 = vadd.f32 %v322_v12, %v199_v5 }
 0x29f   :  { %337 = vst [vmem:[%s607_s5] sm:$0xff] %v369_v13  ;;  %v370_v15 = vpack.c.bf16 %v323_v14, %v321_v11 }
 0x2a1   :  { %338 = vst [vmem:[%s607_s5 + $0x8] sm:$0xff] %v370_v15 }
 0x2a2   :  { %343 = vsyncpa [#allocation3], 1 }
 0x2a3   :  { %344 = vsyncpa [#allocation5], 1 }

</bundles_post_ra>
